<compile_context>
chip_gen: v7x
topology: tpu7x:2x2x1
jax: 0.10.0
libtpu: 0.0.40
codegen_flags: <defaults>
</compile_context>

<pallas_src>
import functools

import numpy as np
import jax
import jax.numpy as jnp
from jax.experimental import pallas as pl
from jax.experimental.pallas import tpu as pltpu


ANCHORS = np.array(
    [[0.0239749, 0.0904281], [0.2569985, 0.3775594], [0.0125396, 0.0429755],
     [0.0255381, 0.0382968], [0.0090712, 0.0187574], [0.0456727, 0.0533909],
     [0.127638, 0.1695816], [0.0189022, 0.0215612], [0.0669595, 0.1037171]],
    dtype=np.float32)
CLASS_NUM = 11
ANCHOR_NUM = 9
MAX_TN = 8192  # cap on the anchor-axis lane tile; per-block VMEM stays < 2 MiB
               # while large N only needs a few grid steps.


# ----------------------------------------------------------------------------
# Pallas kernel: per (anchor-tile, batch) block.
# ----------------------------------------------------------------------------
def _eval_retina_kernel(cls_ref, box_ref, const_ref, out_ref):
    # cls_ref:   (1, C, TN) f32 class logits (feature-major)
    # box_ref:   (1, 4, TN) f32 box regression
    # const_ref: (8, TN)    f32 rows 0:2 anchor_xy - 1e-6, 2:4 0.5*anchor_wh,
    #                          4:6 per-level xy scale, 6:8 zero padding
    # out_ref:   (1, 6, TN) f32 rows 0:4 xyxy, 4 score, 5 label (bitcast i32)
    logits = cls_ref[0]                                    # (C, TN)

    # sigmoid is strictly monotone: max/argmax on logits, then sigmoid only
    # the winning row (1 EUP row instead of C).  First-index-on-ties.
    max_logit = jnp.max(logits, axis=0, keepdims=True)     # (1, TN)
    cls_idx = jax.lax.broadcasted_iota(jnp.int32, logits.shape, 0)
    label = jnp.min(jnp.where(logits >= max_logit, cls_idx, logits.shape[0]),
                    axis=0, keepdims=True)                 # (1, TN) int32
    score = jax.nn.sigmoid(max_logit)                      # (1, TN)

    # correct_box: exp, shift by (anchor_xy - 1e-6), per-level xy scaling,
    # half-wh = exp(wh) * (0.5*anchor_wh) -- both constants pre-baked.
    b = jnp.exp(box_ref[0])                                # (4, TN)
    xy = (b[0:2, :] + const_ref[0:2, :]) * const_ref[4:6, :]
    half = b[2:4, :] * const_ref[2:4, :]

    # xywh -> xyxy (equivalent to obj_box.mm(wt) in box_nms): two (2, TN) slabs.
    out_ref[0, 0:2, :] = xy - half
    out_ref[0, 2:4, :] = xy + half
    out_ref[0, 4:5, :] = score
    out_ref[0, 5:6, :] = pltpu.bitcast(label, jnp.float32)


def run_eval_kernel(cls_preds, box_preds, const_fm, *, tn, obj_thresh):
    """cls_preds: (B, N, C), box_preds: (B, N, 4), const_fm: (8, N_pad).

    Returns dense per-anchor (score, label, valid, boxes_xyxy)."""
    B, N, C = cls_preds.shape
    N_pad = const_fm.shape[1]
    n_tiles = N_pad // tn
    pad = N_pad - N

    # Feature-major + pad the anchor axis onto lanes.  Padded class logits are
    # very negative so padded anchors score ~0 (and are sliced off anyway).
    # TODO(synk): ideally the detection head emits (B, C, N) directly so this
    # transpose+pad (an extra HBM round trip) disappears entirely; it is at
    # least fused under the same jit as the pallas_call.
    cls_t = jnp.pad(jnp.transpose(cls_preds, (0, 2, 1)),
                    ((0, 0), (0, 0), (0, pad)), constant_values=-30.0)
    box_t = jnp.pad(jnp.transpose(box_preds, (0, 2, 1)),
                    ((0, 0), (0, 0), (0, pad)))

    out = pl.pallas_call(
        _eval_retina_kernel,
        out_shape=jax.ShapeDtypeStruct((B, 6, N_pad), jnp.float32),
        grid_spec=pltpu.PrefetchScalarGridSpec(
            num_scalar_prefetch=0,
            grid=(n_tiles, B),  # batch innermost: anchor/scale tile stays resident
            in_specs=[
                pl.BlockSpec((1, C, tn), lambda t, b: (b, 0, t)),
                pl.BlockSpec((1, 4, tn), lambda t, b: (b, 0, t)),
                pl.BlockSpec((8, tn), lambda t, b: (0, t)),
            ],
            out_specs=pl.BlockSpec((1, 6, tn), lambda t, b: (b, 0, t)),
        ),
        compiler_params=pltpu.CompilerParams(
            dimension_semantics=("parallel", "parallel")),
    )(cls_t, box_t, const_fm)

    boxes = jnp.transpose(out[:, 0:4, :N], (0, 2, 1))       # (B, N, 4) xyxy
    score = out[:, 4, :N]                                   # (B, N)
    label = jax.lax.bitcast_convert_type(out[:, 5, :N], jnp.int32)
    valid = jnp.logical_and(label > 0, score > obj_thresh)
    return score, label, valid, boxes


# ----------------------------------------------------------------------------
# Anchor construction (mirrors make_anchors) and host-side NMS.
# ----------------------------------------------------------------------------
def make_anchors_np(width, height):
    levels = [(width // 32, height // 32),
              (width // 16, height // 16),
              (width // 8, height // 8)]
    xy_parts, scale_parts = [], []
    for (W, H) in levels:
        x, y = np.meshgrid(np.arange(W), np.arange(H))            # (H, W)
        xy = np.stack([x, y], axis=-1).reshape(H * W, 1, 2)
        xy = np.broadcast_to(xy, (H * W, ANCHOR_NUM, 2)).reshape(-1, 2)
        xy_parts.append(xy.astype(np.float32))
        sc = np.broadcast_to(np.array([1.0 / W, 1.0 / H], np.float32),
                             (H * W * ANCHOR_NUM, 2))
        scale_parts.append(np.array(sc, dtype=np.float32))
    anchor_xy = np.concatenate(xy_parts, axis=0)
    len_all = sum(W * H for (W, H) in levels)
    anchor_wh = np.broadcast_to(ANCHORS.reshape(1, ANCHOR_NUM, 2),
                                (len_all, ANCHOR_NUM, 2)).reshape(-1, 2)
    anchor_xywh = np.concatenate([anchor_xy, np.array(anchor_wh, np.float32)],
                                 axis=1)                           # (N, 4)
    xy_scale = np.concatenate(scale_parts, axis=0)                 # (N, 2)
    return anchor_xywh, xy_scale


# TODO(synk): greedy class-aware NMS is sequential with data-dependent,
# variable-length output; no clean Pallas equivalent, so it runs host-side.
def box_nms_np(prob, cls_, box, nms_thresh):
    order = np.argsort(-prob, kind="stable")
    prob, cls_, box = prob[order], cls_[order], box[order]
    n = box.shape[0]
    mask = np.ones(n, dtype=bool)
    for i in range(n - 1):
        if not mask[i]:
            continue
        x1 = np.maximum(box[i, 0], box[i + 1:, 0])
        y1 = np.maximum(box[i, 1], box[i + 1:, 1])
        x2 = np.minimum(box[i, 2], box[i + 1:, 2])
        y2 = np.minimum(box[i, 3], box[i + 1:, 3])
        inter = np.maximum(x2 - x1, 0.0) * np.maximum(y2 - y1, 0.0)
        a1 = (box[i, 2] - box[i, 0]) * (box[i, 3] - box[i, 1])
        a2 = (box[i + 1:, 2] - box[i + 1:, 0]) * (box[i + 1:, 3] - box[i + 1:, 1])
        iou = inter / (a1 + a2 - inter)
        suppress = (cls_[i + 1:] == cls_[i]) & (iou > nms_thresh)
        mask[i + 1:] &= ~suppress
    return prob[mask], cls_[mask], box[mask]


class EvalRetinaPallas:
    def __init__(self, width, height, nms_thresh=0.5, obj_thresh=0.4):
        self.width, self.height = width, height
        self.nms_thresh, self.obj_thresh = nms_thresh, obj_thresh

        anchor_xywh, xy_scale = make_anchors_np(width, height)
        self.anchor_xywh = anchor_xywh          # numpy, for references/tests
        self.xy_scale = xy_scale
        self.N = anchor_xywh.shape[0]

        # Pick the biggest anchor tile <= MAX_TN that tiles N with minimal
        # lane padding (equal-size, 128-aligned tiles).
        n_pad_min = ((self.N + 127) // 128) * 128
        if n_pad_min <= MAX_TN:
            self.tn = n_pad_min
            n_tiles = 1
        else:
            n_tiles = -(-n_pad_min // MAX_TN)
            self.tn = ((-(-n_pad_min // n_tiles) + 127) // 128) * 128
        n_pad = n_tiles * self.tn

        # Fused, feature-major, pre-padded constant (built once):
        #   rows 0:2  anchor_xy - 1e-6   (folds correct_box's epsilon)
        #   rows 2:4  0.5 * anchor_wh    (folds the xyxy half-extent scale)
        #   rows 4:6  per-level xy scale (1/W, 1/H)
        #   rows 6:8  zero padding (8 sublanes)
        const = np.zeros((8, n_pad), np.float32)
        const[0:2, :self.N] = anchor_xywh[:, 0:2].T - 1e-6
        const[2:4, :self.N] = 0.5 * anchor_xywh[:, 2:4].T
        const[4:6, :self.N] = xy_scale.T
        self.const_fm = jnp.asarray(const)

        self._dense = jax.jit(functools.partial(
            run_eval_kernel, tn=self.tn, obj_thresh=self.obj_thresh))

    def dense(self, cls_preds, box_preds):
        return self._dense(cls_preds, box_preds, self.const_fm)

    def forward(self, cls_preds, box_preds):
        score, label, valid, boxes = self.dense(cls_preds, box_preds)
        jax.block_until_ready((score, label, valid, boxes))
        score, label, valid, boxes = (np.asarray(score), np.asarray(label),
                                      np.asarray(valid), np.asarray(boxes))
        B = cls_preds.shape[0]
        results = []
        for i in range(B):
            v = valid[i].astype(bool)
            if not v.any():
                results.append(None)
                continue
            p, c, bx = box_nms_np(score[i][v], label[i][v], boxes[i][v],
                                  self.nms_thresh)
            res = np.concatenate(
                [p[:, None], bx, c[:, None].astype(np.float32) - 1.0], axis=1)
            results.append(res)
        return results


if __name__ == "__main__":
    width = height = 64      # small: N = 9 * (2*2 + 4*4 + 8*8) = 756 anchors
    B = 2

    model = EvalRetinaPallas(width, height)
    N = model.N

    key = jax.random.PRNGKey(0)
    k1, k2 = jax.random.split(key)
    cls_preds = jax.random.normal(k1, (B, N, CLASS_NUM), jnp.float32) * 2.0
    box_preds = jax.random.normal(k2, (B, N, 4), jnp.float32) * 0.1

    # Run the Pallas kernel (dense hot path).
    score, label, valid, boxes = model.dense(cls_preds, box_preds)
    jax.block_until_ready((score, label, valid, boxes))

    # Pure-JAX reference check of the kernel's dense math.
    probs_ref = jax.nn.sigmoid(cls_preds)
    score_ref = jnp.max(probs_ref, axis=2)
    label_ref = jnp.argmax(probs_ref, axis=2).astype(jnp.int32)
    b_ref = jnp.exp(box_preds)
    anchor = jnp.asarray(model.anchor_xywh)
    scale = jnp.asarray(model.xy_scale)
    xy_ref = (b_ref[..., 0:2] - 1e-6 + anchor[:, 0:2]) * scale
    wh_ref = b_ref[..., 2:4] * anchor[:, 2:4]
    xyxy_ref = jnp.concatenate([xy_ref - 0.5 * wh_ref, xy_ref + 0.5 * wh_ref],
                               axis=-1)
    valid_ref = jnp.logical_and(label_ref > 0, score_ref > model.obj_thresh)

    np.testing.assert_allclose(np.asarray(score), np.asarray(score_ref),
                               rtol=1e-5, atol=1e-5)
    np.testing.assert_array_equal(np.asarray(label), np.asarray(label_ref))
    np.testing.assert_allclose(np.asarray(boxes), np.asarray(xyxy_ref),
                               rtol=1e-5, atol=1e-4)
    np.testing.assert_array_equal(np.asarray(valid), np.asarray(valid_ref))

    # Full forward (kernel + host NMS), matching evalRetina.forward output.
    results = model.forward(cls_preds, box_preds)
    assert len(results) == B
    for r in results:
        assert r is None or (r.ndim == 2 and r.shape[1] == 6)

    print("KERNEL_OK")
</pallas_src>

<mosaic_0001>
module attributes {stable_mosaic.version = 11 : i64} {
  func.func @_eval_retina_kernel(%arg0: i32, %arg1: i32, %arg2: memref<1x11x768xf32, #tpu.memory_space<vmem>>, %arg3: memref<1x4x768xf32, #tpu.memory_space<vmem>>, %arg4: memref<8x768xf32, #tpu.memory_space<vmem>>, %arg5: memref<1x6x768xf32, #tpu.memory_space<vmem>>) attributes {dimension_semantics = [#tpu.dimension_semantics<parallel>, #tpu.dimension_semantics<parallel>], iteration_bounds = array<i64: 1, 2>, scalar_prefetch = 0 : i64, scratch_operands = 0 : i64, tpu.core_type = #tpu.core_type<tc>, window_params = [{transform_indices = @transform_0, window_bounds = array<i64: 1, 11, 768>}, {transform_indices = @transform_1, window_bounds = array<i64: 1, 4, 768>}, {transform_indices = @transform_2, window_bounds = array<i64: 8, 768>}, {transform_indices = @transform_3, window_bounds = array<i64: 1, 6, 768>}]} {
    %c0 = arith.constant 0 : index
    %c0_0 = arith.constant 0 : index
    %c0_1 = arith.constant 0 : index
    %0 = vector.load %arg2[%c0, %c0_0, %c0_1] : memref<1x11x768xf32, #tpu.memory_space<vmem>>, vector<1x11x768xf32>
    %1 = vector.shape_cast %0 : vector<1x11x768xf32> to vector<11x768xf32>
    %cst = arith.constant dense<0xFF800000> : vector<768xf32>
    %2 = vector.multi_reduction <maximumf>, %1, %cst [0] : vector<11x768xf32> to vector<768xf32>
    %3 = vector.shape_cast %2 : vector<768xf32> to vector<1x768xf32>
    %4 = tpu.iota {dimensions = array<i32: 0>} : vector<11x768xi32>
    %5 = vector.broadcast %3 : vector<1x768xf32> to vector<11x768xf32>
    %6 = arith.cmpf oge, %1, %5 : vector<11x768xf32>
    %c11_i32 = arith.constant 11 : i32
    %7 = vector.broadcast %c11_i32 : i32 to vector<11x768xi32>
    %8 = arith.select %6, %4, %7 : vector<11x768xi1>, vector<11x768xi32>
    %cst_2 = arith.constant dense<2147483647> : vector<768xi32>
    %9 = vector.multi_reduction <minsi>, %8, %cst_2 [0] : vector<11x768xi32> to vector<768xi32>
    %10 = vector.shape_cast %9 : vector<768xi32> to vector<1x768xi32>
    %11 = arith.negf %3 : vector<1x768xf32>
    %12 = math.exp %11 : vector<1x768xf32>
    %cst_3 = arith.constant 1.000000e+00 : f32
    %13 = vector.broadcast %cst_3 : f32 to vector<1x768xf32>
    %14 = arith.addf %13, %12 : vector<1x768xf32>
    %15 = arith.divf %13, %14 : vector<1x768xf32>
    %c0_4 = arith.constant 0 : index
    %c0_5 = arith.constant 0 : index
    %c0_6 = arith.constant 0 : index
    %16 = vector.load %arg3[%c0_4, %c0_5, %c0_6] : memref<1x4x768xf32, #tpu.memory_space<vmem>>, vector<1x4x768xf32>
    %17 = vector.shape_cast %16 : vector<1x4x768xf32> to vector<4x768xf32>
    %18 = math.exp %17 : vector<4x768xf32>
    %19 = vector.extract_strided_slice %18 {offsets = [0, 0], sizes = [2, 768], strides = [1, 1]} : vector<4x768xf32> to vector<2x768xf32>
    %c0_7 = arith.constant 0 : index
    %c0_8 = arith.constant 0 : index
    %20 = vector.load %arg4[%c0_7, %c0_8] : memref<8x768xf32, #tpu.memory_space<vmem>>, vector<2x768xf32>
    %21 = arith.addf %19, %20 : vector<2x768xf32>
    %c4 = arith.constant 4 : index
    %c0_9 = arith.constant 0 : index
    %22 = vector.load %arg4[%c4, %c0_9] : memref<8x768xf32, #tpu.memory_space<vmem>>, vector<2x768xf32>
    %23 = arith.mulf %21, %22 : vector<2x768xf32>
    %24 = vector.extract_strided_slice %18 {offsets = [2, 0], sizes = [2, 768], strides = [1, 1]} : vector<4x768xf32> to vector<2x768xf32>
    %c2 = arith.constant 2 : index
    %c0_10 = arith.constant 0 : index
    %25 = vector.load %arg4[%c2, %c0_10] : memref<8x768xf32, #tpu.memory_space<vmem>>, vector<2x768xf32>
    %26 = arith.mulf %24, %25 : vector<2x768xf32>
    %27 = arith.subf %23, %26 : vector<2x768xf32>
    %c0_11 = arith.constant 0 : index
    %c0_12 = arith.constant 0 : index
    %c0_13 = arith.constant 0 : index
    %28 = vector.load %arg5[%c0_11, %c0_12, %c0_13] : memref<1x6x768xf32, #tpu.memory_space<vmem>>, vector<1x2x768xf32>
    %29 = vector.shape_cast %28 : vector<1x2x768xf32> to vector<2x768xf32>
    %30 = vector.shape_cast %27 : vector<2x768xf32> to vector<1x2x768xf32>
    tpu.vector_store %arg5[%c0_11, %c0_12, %c0_13], %30 {strides = array<i32>} : memref<1x6x768xf32, #tpu.memory_space<vmem>>, vector<1x2x768xf32>,
    %31 = arith.addf %23, %26 : vector<2x768xf32>
    %c0_14 = arith.constant 0 : index
    %c2_15 = arith.constant 2 : index
    %c0_16 = arith.constant 0 : index
    %32 = vector.load %arg5[%c0_14, %c2_15, %c0_16] : memref<1x6x768xf32, #tpu.memory_space<vmem>>, vector<1x2x768xf32>
    %33 = vector.shape_cast %32 : vector<1x2x768xf32> to vector<2x768xf32>
    %34 = vector.shape_cast %31 : vector<2x768xf32> to vector<1x2x768xf32>
    tpu.vector_store %arg5[%c0_14, %c2_15, %c0_16], %34 {strides = array<i32>} : memref<1x6x768xf32, #tpu.memory_space<vmem>>, vector<1x2x768xf32>,
    %c0_17 = arith.constant 0 : index
    %c4_18 = arith.constant 4 : index
    %c0_19 = arith.constant 0 : index
    %35 = vector.load %arg5[%c0_17, %c4_18, %c0_19] : memref<1x6x768xf32, #tpu.memory_space<vmem>>, vector<1x1x768xf32>
    %36 = vector.shape_cast %35 : vector<1x1x768xf32> to vector<1x768xf32>
    %37 = vector.shape_cast %15 : vector<1x768xf32> to vector<1x1x768xf32>
    tpu.vector_store %arg5[%c0_17, %c4_18, %c0_19], %37 {strides = array<i32>} : memref<1x6x768xf32, #tpu.memory_space<vmem>>, vector<1x1x768xf32>,
    %38 = tpu.bitcast %10 : vector<1x768xi32> -> vector<1x768xf32>
    %c0_20 = arith.constant 0 : index
    %c5 = arith.constant 5 : index
    %c0_21 = arith.constant 0 : index
    %39 = vector.load %arg5[%c0_20, %c5, %c0_21] : memref<1x6x768xf32, #tpu.memory_space<vmem>>, vector<1x1x768xf32>
    %40 = vector.shape_cast %39 : vector<1x1x768xf32> to vector<1x768xf32>
    %41 = vector.shape_cast %38 : vector<1x768xf32> to vector<1x1x768xf32>
    tpu.vector_store %arg5[%c0_20, %c5, %c0_21], %41 {strides = array<i32>} : memref<1x6x768xf32, #tpu.memory_space<vmem>>, vector<1x1x768xf32>,
    return
  }
  func.func @transform_0(%arg0: i32, %arg1: i32) -> (i32, i32, i32) {
    %c0_i32 = arith.constant 0 : i32
    %c0_i32_0 = arith.constant 0 : i32
    return %arg1, %c0_i32, %arg0 : i32, i32, i32
  }
  func.func @transform_1(%arg0: i32, %arg1: i32) -> (i32, i32, i32) {
    %c0_i32 = arith.constant 0 : i32
    %c0_i32_0 = arith.constant 0 : i32
    return %arg1, %c0_i32, %arg0 : i32, i32, i32
  }
  func.func @transform_2(%arg0: i32, %arg1: i32) -> (i32, i32) {
    %c0_i32 = arith.constant 0 : i32
    %c0_i32_0 = arith.constant 0 : i32
    return %c0_i32, %arg0 : i32, i32
  }
  func.func @transform_3(%arg0: i32, %arg1: i32) -> (i32, i32, i32) {
    %c0_i32 = arith.constant 0 : i32
    %c0_i32_0 = arith.constant 0 : i32
    return %arg1, %c0_i32, %arg0 : i32, i32, i32
  }
}

</mosaic_0001>

<bundles_post_ra>
// kernel: run_eval_kernel.1
= control target key start
LH: loop header
LB: loop body
LE: loop exit
PB: predicated region body
PF: predicated region fallthrough
CT: control target
= control target key end

     0   :  { %s944_s12 = smov 0   ;;  %s946_s13 = smov 0   ;;  %s1156_s0 = inlined_call_operand.vmem [shape: f32[2,11,768], index: 0, kind: input, shape index: {}]   ;;  %s1157_s1 = inlined_call_operand.vmem [shape: f32[2,4,768], index: 1, kind: input, shape index: {}]   ;;  %s1158_s2 = inlined_call_operand.vmem [shape: f32[8,768], index: 2, kind: input, shape index: {}]   ;;  %s1159_s3 = inlined_call_operand.vmem [shape: f32[2,6,768], index: 3, kind: output, shape index: {}]  }
   0x1   :  { %s948_s14 = smov 0  }
   0x2 LB: > { %s22_s15 = sadd.s32 1, %s917_s13  ;;  %p816_p0 = scmp.ge.s32.totalorder %s921_s14, 1  ;;  %s921_s14 = sphi %s948_s14, %s13_s14   ;;  %s917_s13 = sphi %s946_s13, %s1161_s13   ;;  %s913_s12 = sphi %s944_s12, %s1160_s12  }
   0x3   : > { %p23_p1 = scmp.ge.s32.totalorder %s22_s15, 2  ;;  %p186_p2 = scmp.lt.s32.totalorder %s921_s14, 3 }
   0x5   : > { %s1163_s15 = smov (%p23_p1, %s22_s15), 0  ;;  %p187_p3 = pnand %p816_p0, %p186_p2 }
   0x6   : > { %p233_p4 = scmp.lt.s32.totalorder (!%p187_p3), %s913_s12, 1  ;;  %vm280_vm0 = vcmask (!%p187_p3), 1042432   ;;  %v860_v16 = vld [vmem:[%s1158_s2] ss:$8 sps:$4 sm:$0x33] (!%p187_p3)   ;;  %v329_v22 = vlaneseq (!%p187_p3) }
   0x7   : > { %190 = sbr.rel (%p187_p3) target bundleno = 95 (0x5f), region = 32  ;;  %v862_v17 = vld [vmem:[%s1158_s2] ss:$8 sps:$4 sm:$0xcc] (!%p187_p3)   ;;  %v923_v23 = vmov (!%p187_p3), 1966171168  }
   0x8   : > { %v1006_v24 = vunpack.c.l.s4 (!%p187_p3), %v923_v23  ;;  %v863_v25 = vld [vmem:[%s1158_s2 + $0x10] ss:$8 sps:$4 sm:$0x33] (!%p187_p3)   ;;  %v861_v30 = vld [vmem:[%s1158_s2 + $0x4] ss:$8 sps:$4 sm:$0x33] (!%p187_p3)  }
   0x9   : > { %v865_v31 = vld [vmem:[%s1158_s2 + $0x10] ss:$8 sps:$4 sm:$0xcc] (!%p187_p3)   ;;  %v866_v36 = vld [vmem:[%s1158_s2 + $0x20] ss:$8 sps:$4 sm:$0x33] (!%p187_p3)  }
   0xa   : > { %v868_v41 = vld [vmem:[%s1158_s2 + $0x20] ss:$8 sps:$4 sm:$0xcc] (!%p187_p3)   ;;  %v1042_v44 = vshrl.u32 (!%p187_p3), %v329_v22, 7  ;;  %v604_v45 = vunpack.c.0.s8 (!%p187_p3), %v1006_v24 }
   0xb   : > { %v864_v47 = vld [vmem:[%s1158_s2 + $0x14] ss:$8 sps:$4 sm:$0x33] (!%p187_p3)   ;;  %v867_v55 = vld [vmem:[%s1158_s2 + $0x24] ss:$8 sps:$4 sm:$0x33] (!%p187_p3)  }
   0xe   : > { %s1165_s12 = smov (!%p233_p4, %s913_s12), 1 }
   0xf   : > { %s832_s16 = smul.u32 96, %s1165_s12 }
  0x10   : > { %s833_s17 = smul.u32 24, %s1165_s12 }
  0x11   : > { %s240_s23 = scalar_lea.vmem %s1156_s0, %s832_s16  ;;  %s834_s19 = smul.u32 48, %s1165_s12 }
  0x12   : > { %s250_s20 = scalar_lea.vmem %s1157_s1, %s833_s17  ;;  %v972_v6 = vld [vmem:[%s240_s23] sm:$0xff]  ;;  %v974_v7 = vld [vmem:[%s240_s23 + $0x8] sm:$0xff]  ;;  %v976_v8 = vld [vmem:[%s240_s23 + $0x10] sm:$0xff] }
  0x13   : > { %v464_v0 = vld [vmem:[%s250_s20] sm:$0xff]  ;;  %v465_v1 = vld [vmem:[%s250_s20 + $0x8] sm:$0xff]  ;;  %v466_v4 = vld [vmem:[%s250_s20 + $0x10] sm:$0xff]  ;;  %s1057_s12 = scalar_lea.vmem %s1159_s3, %s834_s19 }
  0x14   : > { %v467_v2 = vmul.f32 1.442695, %v464_v0  ;;  %v469_v3 = vmul.f32 1.442695, %v465_v1  ;;  %v471_v5 = vmul.f32 1.442695, %v466_v4 }
  0x15   : > { %v978_v9 = vld [vmem:[%s240_s23 + $0x18] sm:$0xff]  ;;  %v980_v10 = vld [vmem:[%s240_s23 + $0x20] sm:$0xff]  ;;  %v982_v11 = vld [vmem:[%s240_s23 + $0x28] sm:$0xff] }
  0x16   : > { %869 = vpow2.f32 %v467_v2  ;;  %v984_v12 = vld [vmem:[%s240_s23 + $0x30] sm:$0x7]  ;;  %v986_v13 = vld [vmem:[%s240_s23 + $0x38] sm:$0x7]  ;;  %v988_v14 = vld [vmem:[%s240_s23 + $0x40] sm:$0x7] }
  0x17   : > { %871 = vpow2.f32 %v469_v3  ;;  %v990_v15 = vld [vmem:[%s240_s23 + $0x48] sm:$0x7]  ;;  %v998_v18 = vld [vmem:[%s240_s23 + $0x50] sm:$0x7]  ;;  %v1000_v19 = vld [vmem:[%s240_s23 + $0x58] sm:$0x7] }
  0x18   : > { %873 = vpow2.f32 %v471_v5  ;;  %v281_v20 = vsel %vm280_vm0, %v984_v12, -inf  ;;  %v289_v21 = vsel %vm280_vm0, %v986_v13, -inf  ;;  %v297_v28 = vsel %vm280_vm0, %v988_v14, -inf }
  0x19   : > { %v282_v26 = vmax.f32 %v972_v6, %v281_v20  ;;  %v290_v27 = vmax.f32 %v974_v7, %v289_v21  ;;  %v305_v29 = vsel %vm280_vm0, %v990_v15, -inf  ;;  %v298_v32 = vmax.f32 %v976_v8, %v297_v28 }
  0x1a   : > { %v306_v33 = vmax.f32 %v978_v9, %v305_v29  ;;  %v313_v34 = vsel %vm280_vm0, %v998_v18, -inf  ;;  %v321_v35 = vsel %vm280_vm0, %v1000_v19, -inf }
  0x1b   : > { %v283_v37 = vrot.slane %v282_v26, 4  ;;  %v291_v38 = vrot.slane %v290_v27, 4  ;;  %v1033_v39 = vmax.f32 %v980_v10, %v313_v34  ;;  %v1036_v40 = vmax.f32 %v982_v11, %v321_v35 }
  0x1c   : > { %v299_v42 = vrot.slane %v298_v32, 4  ;;  %v307_v43 = vrot.slane %v306_v33, 4 }
  0x1d   : > { %v284_v48 = vmax.f32 %v282_v26, %v283_v37  ;;  %v292_v49 = vmax.f32 %v290_v27, %v291_v38  ;;  %v315_v50 = vrot.slane %v1033_v39, 4  ;;  %v323_v51 = vrot.slane %v1036_v40, 4 }
  0x1e   : > { %v300_v56 = vmax.f32 %v298_v32, %v299_v42  ;;  %v308_v57 = vmax.f32 %v306_v33, %v307_v43 }
  0x1f   : > { %v285_v61 = vrot.slane %v284_v48, 2  ;;  %v293_v62 = vrot.slane %v292_v49, 2 }
  0x20   : > { %v870_v46 = vpop.eup %869  ;;  %v301_v23 = vrot.slane %v300_v56, 2  ;;  %v309_v28 = vrot.slane %v308_v57, 2 }
  0x21   : > { %v872_v52 = vpop.eup %871  ;;  %v491_v53 = vadd.f32 %v870_v46, %v860_v16  ;;  %v533_v54 = vmul.f32 %v870_v46, %v862_v17  ;;  %v286_v5 = vmax.f32 %v284_v48, %v285_v61  ;;  %v294_v16 = vmax.f32 %v292_v49, %v293_v62 }
  0x22   : > { %v874_v58 = vpop.eup %873  ;;  %v492_v59 = vadd.f32 %v872_v52, %v863_v25  ;;  %v534_v60 = vmul.f32 %v872_v52, %v865_v31  ;;  %v302_v32 = vmax.f32 %v300_v56, %v301_v23  ;;  %v324_v62 = vmax.f32 %v1036_v40, %v323_v51 }
  0x23   : > { %v512_v63 = vmul.f32 %v861_v30, %v491_v53  ;;  %v539_v0 = vrot.slane %v533_v54, 6  ;;  %v493_v1 = vadd.f32 %v874_v58, %v866_v36  ;;  %v535_v2 = vmul.f32 %v874_v58, %v868_v41 }
  0x24   : > { %v513_v3 = vmul.f32 %v864_v47, %v492_v59  ;;  %v541_v4 = vrot.slane %v534_v60, 6  ;;  %v287_v26 = vrot.slane %v286_v5, 1  ;;  %v295_v27 = vrot.slane %v294_v16, 1 }
  0x25   : > { %v540_v17 = vrot.slane %v539_v0, 4  ;;  %v514_v20 = vmul.f32 %v867_v55, %v493_v1  ;;  %v543_v21 = vrot.slane %v535_v2, 6  ;;  %v303_v53 = vrot.slane %v302_v32, 1 }
  0x26   : > { %v542_v25 = vrot.slane %v541_v4, 4  ;;  %v1059_v35 = vmax.f32 %v286_v5, %v287_v26  ;;  %v1061_v36 = vmax.f32 %v294_v16, %v295_v27  ;;  %v310_v54 = vmax.f32 %v308_v57, %v309_v28 }
  0x27   : > { %v548_v29 = vsub.f32 %v512_v63, %v540_v17  ;;  %v544_v30 = vrot.slane %v543_v21, 4  ;;  %v566_v31 = vadd.f32 %v540_v17, %v512_v63  ;;  %v316_v59 = vmax.f32 %v1033_v39, %v315_v50 }
  0x28   : > { %v549_v33 = vsub.f32 %v513_v3, %v542_v25  ;;  %v567_v34 = vadd.f32 %v542_v25, %v513_v3  ;;  %v304_v60 = vmax.f32 %v302_v32, %v303_v53  ;;  %v311_v61 = vrot.slane %v310_v54, 1 }
  0x29   : > { %560 = vst [vmem:[%s1057_s12] sm:$0x3] %v548_v29  ;;  %v554_v37 = vcombine.high %v548_v29, %v548_v29  ;;  %v550_v38 = vsub.f32 %v514_v20, %v544_v30  ;;  %v575_v41 = vrot.slane %v566_v31, 6  ;;  %v572_v42 = vcombine.high %v566_v31, %v566_v31 }
  0x2a   : > { %562 = vst [vmem:[%s1057_s12 + $0x10] sm:$0x3] %v549_v33  ;;  %v555_v43 = vcombine.high %v549_v33, %v549_v33  ;;  %v577_v46 = vrot.slane %v567_v34, 6  ;;  %v573_v47 = vcombine.high %v567_v34, %v567_v34  ;;  %v568_v48 = vadd.f32 %v544_v30, %v514_v20 }
  0x2b   : > { %561 = vst [vmem:[%s1057_s12 + $0x8] sm:$0x3] %v554_v37  ;;  %564 = vst [vmem:[%s1057_s12 + $0x20] sm:$0x3] %v550_v38  ;;  %v556_v49 = vcombine.high %v550_v38, %v550_v38  ;;  %v576_v52 = vrot.slane %v572_v42, 6  ;;  %v317_v0 = vrot.slane %v316_v59, 2  ;;  %v312_v2 = vmax.f32 %v310_v54, %v311_v61 }
  0x2c   : > { %587 = vst [vmem:[%s1057_s12] sm:$0xc] %v575_v41  ;;  %563 = vst [vmem:[%s1057_s12 + $0x18] sm:$0x3] %v555_v43  ;;  %v578_v55 = vrot.slane %v573_v47, 6  ;;  %v579_v56 = vrot.slane %v568_v48, 6  ;;  %v574_v58 = vcombine.high %v568_v48, %v568_v48  ;;  %v325_v3 = vrot.slane %v324_v62, 2 }
  0x2d   : > { %589 = vst [vmem:[%s1057_s12 + $0x10] sm:$0xc] %v577_v46  ;;  %565 = vst [vmem:[%s1057_s12 + $0x28] sm:$0x3] %v556_v49  ;;  %v820_v63 = vmul.f32 -1.442695, %v1059_v35  ;;  %v318_v50 = vmax.f32 %v316_v59, %v317_v0  ;;  %v1084_v4 = vsub.s32 %v604_v45, %v1042_v44  ;;  %vm332_vm1 = vcmp.ge.f32.partialorder %v972_v6, %v1059_v35 }
  0x2e   : > { %588 = vst [vmem:[%s1057_s12 + $0x8] sm:$0xc] %v576_v52  ;;  %590 = vst [vmem:[%s1057_s12 + $0x18] sm:$0xc] %v578_v55  ;;  %v580_v57 = vrot.slane %v574_v58, 6  ;;  %v326_v40 = vmax.f32 %v324_v62, %v325_v3  ;;  %v331_v5 = vadd.s32 8, %v1042_v44  ;;  %vm333_vm2 = vcmp.ge.f32.partialorder %v974_v7, %v1061_v36 }
  0x2f   : > { %591 = vst [vmem:[%s1057_s12 + $0x20] sm:$0xc] %v579_v56  ;;  %v821_v1 = vmul.f32 -1.442695, %v1061_v36  ;;  %875 = vpow2.f32 %v820_v63  ;;  %v822_v39 = vmul.f32 -1.442695, %v304_v60  ;;  %vm334_vm3 = vcmp.ge.f32.partialorder %v976_v8, %v304_v60 }
  0x30   : > { %592 = vst [vmem:[%s1057_s12 + $0x28] sm:$0xc] %v580_v57  ;;  %v823_v51 = vmul.f32 -1.442695, %v312_v2  ;;  %v319_v16 = vrot.slane %v318_v50, 1  ;;  %v327_v17 = vrot.slane %v326_v40, 1  ;;  %vm335_vm4 = vcmp.ge.f32.partialorder %v978_v9, %v312_v2 }
  0x31   : > { %877 = vpow2.f32 %v821_v1  ;;  %vm338_vm5 = vcmp.ge.f32.partialorder %v984_v12, %v1059_v35  ;;  %vm339_vm6 = vcmp.ge.f32.partialorder %v986_v13, %v1061_v36  ;;  %vm340_vm7 = vcmp.ge.f32.partialorder %v988_v14, %v304_v60 }
  0x32   : > { %879 = vpow2.f32 %v822_v39  ;;  %v320_v24 = vmax.f32 %v318_v50, %v319_v16  ;;  %vm341_vm8 = vcmp.ge.f32.partialorder %v990_v15, %v312_v2  ;;  %v1099_v6 = vmax.f32 %v326_v40, %v327_v17 }
  0x33   : > { %881 = vpow2.f32 %v823_v51  ;;  %v344_v7 = vsel %vm332_vm1, %v1042_v44, 11  ;;  %v345_v8 = vsel %vm333_vm2, %v1042_v44, 11  ;;  %v346_v45 = vsel %vm334_vm3, %v1042_v44, 11 }
  0x34   : > { %v824_v20 = vmul.f32 -1.442695, %v320_v24  ;;  %vm336_vm9 = vcmp.ge.f32.partialorder %v980_v10, %v320_v24  ;;  %vm342_vm10 = vcmp.ge.f32.partialorder %v998_v18, %v320_v24  ;;  %v350_v12 = vsel %vm338_vm5, %v331_v5, 11 }
  0x35   : > { %v825_v13 = vmul.f32 -1.442695, %v1099_v6  ;;  %vm343_vm11 = vcmp.ge.f32.partialorder %v1000_v19, %v1099_v6  ;;  %v347_v21 = vsel %vm335_vm4, %v1042_v44, 11  ;;  %v351_v23 = vsel %vm339_vm6, %v331_v5, 11 }
  0x36   : > { %883 = vpow2.f32 %v824_v20  ;;  %v348_v25 = vsel %vm336_vm9, %v1042_v44, 11  ;;  %v352_v26 = vsel %vm340_vm7, %v331_v5, 11  ;;  %v353_v10 = vsel %vm341_vm8, %v331_v5, 11 }
  0x37   : > { %885 = vpow2.f32 %v825_v13  ;;  %v354_v27 = vsel %vm342_vm10, %v331_v5, 11  ;;  %v1117_v28 = vsel %vm343_vm11, %v331_v5, 11  ;;  %v356_v19 = vsel %vm280_vm0, %v350_v12, 2147483647 }
  0x38   : > { %vm357_vm12 = vcmp.lt.s32.totalorder %v344_v7, %v356_v19  ;;  %v368_v30 = vsel %vm280_vm0, %v351_v23, 2147483647  ;;  %v380_v31 = vsel %vm280_vm0, %v352_v26, 2147483647  ;;  %vm337_vm15 = vcmp.ge.f32.partialorder %v982_v11, %v1099_v6 }
  0x39   : > { %v876_v18 = vpop.eup %875  ;;  %v358_v33 = vsel %vm357_vm12, %v344_v7, %v356_v19  ;;  %vm369_vm13 = vcmp.lt.s32.totalorder %v345_v8, %v368_v30  ;;  %vm381_vm14 = vcmp.lt.s32.totalorder %v346_v45, %v380_v31  ;;  %v392_v41 = vsel %vm280_vm0, %v353_v10, 2147483647 }
  0x3a   : > { %v446_v9 = vadd.f32 1.0, %v876_v18  ;;  %v359_v34 = vrot.slane %v358_v33, 4  ;;  %v370_v35 = vsel %vm369_vm13, %v345_v8, %v368_v30  ;;  %v382_v38 = vsel %vm381_vm14, %v346_v45, %v380_v31 }
  0x3b   : > { %v878_v29 = vpop.eup %877  ;;  %v371_v37 = vrot.slane %v370_v35, 4  ;;  %v383_v43 = vrot.slane %v382_v38, 4  ;;  %vm393_vm3 = vcmp.lt.s32.totalorder %v347_v21, %v392_v41  ;;  %v404_v47 = vsel %vm280_vm0, %v354_v27, 2147483647 }
  0x3c   : > { %v880_v32 = vpop.eup %879  ;;  %v447_v14 = vadd.f32 1.0, %v878_v29  ;;  %887 = vrcp.f32 %v446_v9  ;;  %vm360_vm1 = vcmp.lt.s32.totalorder %v358_v33, %v359_v34  ;;  %v394_v54 = vsel %vm393_vm3, %v347_v21, %v392_v41 }
  0x3d   : > { %v448_v15 = vadd.f32 1.0, %v880_v32  ;;  %v882_v36 = vpop.eup %881  ;;  %v361_v46 = vsel %vm360_vm1, %v358_v33, %v359_v34  ;;  %vm372_vm2 = vcmp.lt.s32.totalorder %v370_v35, %v371_v37  ;;  %vm384_vm4 = vcmp.lt.s32.totalorder %v382_v38, %v383_v43 }
  0x3e   : > { %889 = vrcp.f32 %v447_v14  ;;  %v449_v42 = vadd.f32 1.0, %v882_v36  ;;  %v362_v48 = vrot.slane %v361_v46, 2  ;;  %v373_v49 = vsel %vm372_vm2, %v370_v35, %v371_v37 }
  0x3f   : > { %891 = vrcp.f32 %v448_v15  ;;  %v374_v52 = vrot.slane %v373_v49, 2  ;;  %v385_v53 = vsel %vm384_vm4, %v382_v38, %v383_v43  ;;  %vm405_vm5 = vcmp.lt.s32.totalorder %v348_v25, %v404_v47 }
  0x40   : > { %893 = vrcp.f32 %v449_v42  ;;  %v884_v55 = vpop.eup %883  ;;  %vm363_vm6 = vcmp.lt.s32.totalorder %v361_v46, %v362_v48  ;;  %v386_v56 = vrot.slane %v385_v53, 2  ;;  %v395_v58 = vrot.slane %v394_v54, 4 }
  0x41   : > { %v406_v59 = vsel %vm405_vm5, %v348_v25, %v404_v47  ;;  %v886_v60 = vpop.eup %885  ;;  %v450_v61 = vadd.f32 1.0, %v884_v55  ;;  %v364_v62 = vsel %vm363_vm6, %v361_v46, %v362_v48  ;;  %vm375_vm7 = vcmp.lt.s32.totalorder %v373_v49, %v374_v52 }
  0x42   : > { %v407_v63 = vrot.slane %v406_v59, 4  ;;  %v451_v57 = vadd.f32 1.0, %v886_v60  ;;  %v365_v0 = vrot.slane %v364_v62, 1  ;;  %v376_v1 = vsel %vm375_vm7, %v373_v49, %v374_v52 }
  0x43   : > { %vm387_vm8 = vcmp.lt.s32.totalorder %v385_v53, %v386_v56  ;;  %895 = vrcp.f32 %v450_v61  ;;  %v377_v2 = vrot.slane %v376_v1, 1  ;;  %vm396_vm9 = vcmp.lt.s32.totalorder %v394_v54, %v395_v58 }
  0x44   : > { %v388_v3 = vsel %vm387_vm8, %v385_v53, %v386_v56  ;;  %897 = vrcp.f32 %v451_v57  ;;  %vm366_vm10 = vcmp.lt.s32.totalorder %v364_v62, %v365_v0  ;;  %v397_v40 = vsel %vm396_vm9, %v394_v54, %v395_v58 }
  0x45   : > { %v389_v50 = vrot.slane %v388_v3, 1  ;;  %v349_v5 = vsel %vm337_vm15, %v1042_v44, 11  ;;  %vm378_vm11 = vcmp.lt.s32.totalorder %v376_v1, %v377_v2  ;;  %v398_v16 = vrot.slane %v397_v40, 2 }
  0x46   : > { %v888_v39 = vpop.eup %887  ;;  %vm408_vm12 = vcmp.lt.s32.totalorder %v406_v59, %v407_v63  ;;  %v367_v7 = vsel %vm366_vm10, %v364_v62, %v365_v0  ;;  %v416_v20 = vsel %vm280_vm0, %v1117_v28, 2147483647  ;;  %v379_v21 = vsel %vm378_vm11, %v376_v1, %v377_v2 }
  0x47   : > { %v409_v8 = vsel %vm408_vm12, %v406_v59, %v407_v63  ;;  %vm390_vm13 = vcmp.lt.s32.totalorder %v388_v3, %v389_v50  ;;  %vm399_vm14 = vcmp.lt.s32.totalorder %v397_v40, %v398_v16  ;;  %vm417_vm1 = vcmp.lt.s32.totalorder %v349_v5, %v416_v20 }
  0x48   : > { %v890_v51 = vpop.eup %889  ;;  %v410_v45 = vrot.slane %v409_v8, 2  ;;  %v400_v23 = vsel %vm399_vm14, %v397_v40, %v398_v16  ;;  %v418_v6 = vsel %vm417_vm1, %v349_v5, %v416_v20  ;;  %v391_v25 = vsel %vm390_vm13, %v388_v3, %v389_v50 }
  0x49   : > { %v892_v17 = vpop.eup %891  ;;  %v599_v24 = vcombine.low %v888_v39, %v890_v51  ;;  %v401_v44 = vrot.slane %v400_v23, 1  ;;  %v419_v10 = vrot.slane %v418_v6, 4  ;;  %v647_v28 = vcombine.low %v367_v7, %v379_v21 }
  0x4a   : > { %v894_v12 = vpop.eup %893  ;;  %vm411_vm15 = vcmp.lt.s32.totalorder %v409_v8, %v410_v45  ;;  %vm642_vm5 = vcmp.lt.s32.totalorder %v329_v22, 768 }
  0x4b   : > { %v608_v13 = vrot.slane %v599_v24, %v1084_v4  ;;  %v600_v11 = vcombine.low %v892_v17, %v894_v12  ;;  %v412_v26 = vsel %vm411_vm15, %v409_v8, %v410_v45  ;;  %vm402_vm2 = vcmp.lt.s32.totalorder %v400_v23, %v401_v44 }
  0x4c   : > { %v403_v27 = vsel %vm402_vm2, %v400_v23, %v401_v44  ;;  %v413_v19 = vrot.slane %v412_v26, 1  ;;  %vm420_vm3 = vcmp.lt.s32.totalorder %v418_v6, %v419_v10  ;;  %v656_v15 = vrot.slane %v647_v28, %v1084_v4 }
  0x4d   : > { %v615_v18 = vrot.slane %v600_v11, %v1084_v4  ;;  %v896_v29 = vpop.eup %895  ;;  %v421_v30 = vsel %vm420_vm3, %v418_v6, %v419_v10  ;;  %v648_v31 = vcombine.low %v391_v25, %v403_v27 }
  0x4e   : > { %v898_v32 = vpop.eup %897  ;;  %v422_v14 = vrot.slane %v421_v30, 2  ;;  %vm414_vm0 = vcmp.lt.s32.totalorder %v412_v26, %v413_v19 }
  0x4f   : > { %v623_v9 = vcombine.low %v608_v13, %v615_v18  ;;  %v601_v33 = vcombine.low %v896_v29, %v898_v32  ;;  %v663_v34 = vrot.slane %v648_v31, %v1084_v4  ;;  %v415_v42 = vsel %vm414_vm0, %v412_v26, %v413_v19 }
  0x50   : > { %vm423_vm4 = vcmp.lt.s32.totalorder %v421_v30, %v422_v14 }
  0x51   : > { %v622_v35 = vrot.slane %v601_v33, %v1084_v4  ;;  %v630_v36 = vrot.slane %v623_v9, %v1084_v4  ;;  %v424_v37 = vsel %vm423_vm4, %v421_v30, %v422_v14  ;;  %v671_v43 = vcombine.low %v656_v15, %v663_v34 }
  0x52   : > { %v425_v38 = vrot.slane %v424_v37, 1 }
  0x53   : > { %v637_v41 = vrot.slane %v622_v35, %v1084_v4  ;;  %v678_v52 = vrot.slane %v671_v43, %v1084_v4 }
  0x54   : > { %vm426_vm6 = vcmp.lt.s32.totalorder %v424_v37, %v425_v38 }
  0x55   : > { %v638_v46 = vcombine.low %v630_v36, %v637_v41  ;;  %v427_v47 = vsel %vm426_vm6, %v424_v37, %v425_v38 }
  0x56   : > { %v649_v48 = vcombine.low %v415_v42, %v427_v47 }
  0x57   : > { %826 = vst.msk [vmem:[%s1057_s12 + $0x4] ss:$8 sm:$0xf] %vm642_vm5, %v638_v46  ;;  %827 = vst.msk [vmem:[%s1057_s12 + $0x4] ss:$8 sm:$0x30] %vm642_vm5, %v638_v46 }
  0x58   : > { %v670_v49 = vrot.slane %v649_v48, %v1084_v4 }
  0x5a   : > { %v685_v53 = vrot.slane %v670_v49, %v1084_v4 }
  0x5c   : > { %v686_v54 = vcombine.low %v678_v52, %v685_v53 }
  0x5e   : > { %828 = vst.msk [vmem:[%s1057_s12 + $0x5] ss:$8 sm:$0xf] %vm642_vm5, %v686_v54  ;;  %829 = vst.msk [vmem:[%s1057_s12 + $0x5] ss:$8 sm:$0x30] %vm642_vm5, %v686_v54 }
  0x5f PF: > { %s13_s14 = sadd.s32 1, %s921_s14   ;;  %s1160_s12 = smov %s917_s13 }
  0x60   : > { %p10_p5 = scmp.ge.s32.totalorder %s13_s14, 4   ;;  %s1161_s13 = smov %s1163_s15 }
  0x62   :  { %12 = sbr.rel (!%p10_p5) target bundleno = 2 (0x2), region = 70 }

</bundles_post_ra>
